<compile_context>
chip_gen: v6e
topology: v6e:2x2x1
jax: 0.10.0
libtpu: 0.0.40
codegen_flags: <defaults>
</compile_context>

<pallas_src>
import functools

import jax
import jax.numpy as jnp
import numpy as np
from jax.experimental import pallas as pl
from jax.experimental.pallas import tpu as pltpu

IN_FEATURES = 64
OUT_FEATURES = 2


def _round_up(n: int, m: int) -> int:
    return ((n + m - 1) // m) * m


def _linear_kernel(x_ref, w_ref, b_ref, o_ref):
    # x_ref: [TB, 64], w_ref: [64, 2], b_ref: [1, 2], o_ref: [TB, 2]
    acc = jnp.dot(x_ref[...], w_ref[...], preferred_element_type=jnp.float32)
    o_ref[...] = (acc + b_ref[...]).astype(o_ref.dtype)


def prepare_params(weight, bias):
    """Hoist the layout prep out of the per-call path.

    weight: [2, 64] (PyTorch nn.Linear layout), bias: [2]
    returns w_t: [64, 2], b2d: [1, 2]
    """
    return weight.T, bias.reshape(1, OUT_FEATURES)


@functools.partial(jax.jit, static_argnames=("tb",))
def basenet_forward(x, w_t, b2d, *, tb=1024):
    """x: [B, C, H, W] (NCHW) with C*H*W == 64; w_t: [64, 2]; b2d: [1, 2]."""
    B = x.shape[0]
    x_flat = x.reshape(B, -1)                       # torch.flatten(x, 1)
    assert x_flat.shape[1] == IN_FEATURES, "Basenet expects 64 flattened features"

    # Effective batch tile: multiple of 8 sublanes, capped by (padded) B so
    # tiny batches don't blow the block up to 1024 rows of padding.
    tb_eff = min(_round_up(tb, 8), _round_up(B, 8))
    B_pad = _round_up(B, tb_eff)
    if B_pad != B:
        x_flat = jnp.pad(x_flat, ((0, B_pad - B), (0, 0)))

    grid = (B_pad // tb_eff,)

    out = pl.pallas_call(
        _linear_kernel,
        out_shape=jax.ShapeDtypeStruct((B_pad, OUT_FEATURES), jnp.float32),
        grid=grid,
        in_specs=[
            pl.BlockSpec((tb_eff, IN_FEATURES), lambda i: (i, 0)),   # streamed x tiles
            pl.BlockSpec((IN_FEATURES, OUT_FEATURES), lambda i: (0, 0)),  # resident W
            pl.BlockSpec((1, OUT_FEATURES), lambda i: (0, 0)),            # resident b
        ],
        out_specs=pl.BlockSpec((tb_eff, OUT_FEATURES), lambda i: (i, 0)),
        compiler_params=pltpu.CompilerParams(
            dimension_semantics=("parallel",),  # shard batch across v7x TCs
        ),
    )(x_flat, w_t, b2d)

    return out[:B]


def init_params(key):
    """Deterministic init mimicking nn.Linear(64, 2) default init."""
    k_w, k_b = jax.random.split(key)
    bound = 1.0 / np.sqrt(float(IN_FEATURES))
    weight = jax.random.uniform(k_w, (OUT_FEATURES, IN_FEATURES), jnp.float32, -bound, bound)
    bias = jax.random.uniform(k_b, (OUT_FEATURES,), jnp.float32, -bound, bound)
    return weight, bias


if __name__ == "__main__":
    key = jax.random.PRNGKey(0)
    k_x, k_p = jax.random.split(key)

    # Small NCHW input that flattens to 64 features: [2, 4, 4, 4]
    x = jax.random.normal(k_x, (2, 4, 4, 4), jnp.float32)
    weight, bias = init_params(k_p)
    w_t, b2d = prepare_params(weight, bias)     # hoisted once, not per call

    y = basenet_forward(x, w_t, b2d)
    y = jax.block_until_ready(y)

    # Reference check (plain JAX)
    y_ref = x.reshape(x.shape[0], -1) @ weight.T + bias
    np.testing.assert_allclose(np.asarray(y), np.asarray(y_ref), rtol=1e-5, atol=1e-5)

    # Exercise the tiled/pipelined path with a larger, non-multiple batch too.
    x_big = jax.random.normal(k_x, (2050, 4, 4, 4), jnp.float32)
    y_big = jax.block_until_ready(basenet_forward(x_big, w_t, b2d))
    y_big_ref = x_big.reshape(x_big.shape[0], -1) @ weight.T + bias
    np.testing.assert_allclose(np.asarray(y_big), np.asarray(y_big_ref), rtol=1e-4, atol=1e-4)

    print("KERNEL_OK")
</pallas_src>

<mosaic_0001>
module attributes {stable_mosaic.version = 11 : i64} {
  func.func @_linear_kernel(%arg0: i32, %arg1: memref<8x64xf32, #tpu.memory_space<vmem>>, %arg2: memref<64x2xf32, #tpu.memory_space<vmem>>, %arg3: memref<1x2xf32, #tpu.memory_space<vmem>>, %arg4: memref<8x2xf32, #tpu.memory_space<vmem>>) attributes {dimension_semantics = [#tpu.dimension_semantics<parallel>], iteration_bounds = array<i64: 1>, scalar_prefetch = 0 : i64, scratch_operands = 0 : i64, tpu.core_type = #tpu.core_type<tc>, window_params = [{transform_indices = @transform_0, window_bounds = array<i64: 8, 64>}, {pipeline_mode = #tpu.pipeline_mode<synchronous>, transform_indices = @transform_1, window_bounds = array<i64: 64, 2>}, {pipeline_mode = #tpu.pipeline_mode<synchronous>, transform_indices = @transform_2, window_bounds = array<i64: 1, 2>}, {transform_indices = @transform_3, window_bounds = array<i64: 8, 2>}]} {
    %c0 = arith.constant 0 : index
    %c0_0 = arith.constant 0 : index
    %0 = vector.load %arg1[%c0, %c0_0] : memref<8x64xf32, #tpu.memory_space<vmem>>, vector<8x64xf32>
    %c0_1 = arith.constant 0 : index
    %c0_2 = arith.constant 0 : index
    %1 = vector.load %arg2[%c0_1, %c0_2] : memref<64x2xf32, #tpu.memory_space<vmem>>, vector<64x2xf32>
    %cst = arith.constant dense<0.000000e+00> : vector<8x2xf32>
    %2 = tpu.matmul %0, %1, %cst {dimension_numbers = #tpu.dot_dimension_numbers<[1], [0], [0], [1], [0, 0, 1, 1], [], []>} : vector<8x64xf32>, vector<64x2xf32>, vector<8x2xf32> -> vector<8x2xf32>
    %c0_3 = arith.constant 0 : index
    %c0_4 = arith.constant 0 : index
    %3 = vector.load %arg3[%c0_3, %c0_4] : memref<1x2xf32, #tpu.memory_space<vmem>>, vector<1x2xf32>
    %4 = vector.broadcast %3 : vector<1x2xf32> to vector<8x2xf32>
    %5 = arith.addf %2, %4 : vector<8x2xf32>
    %c0_5 = arith.constant 0 : index
    %c0_6 = arith.constant 0 : index
    %6 = vector.load %arg4[%c0_5, %c0_6] : memref<8x2xf32, #tpu.memory_space<vmem>>, vector<8x2xf32>
    tpu.vector_store %arg4[%c0_5, %c0_6], %5 {strides = array<i32>} : memref<8x2xf32, #tpu.memory_space<vmem>>, vector<8x2xf32>,
    return
  }
  func.func @transform_0(%arg0: i32) -> (i32, i32) {
    %c0_i32 = arith.constant 0 : i32
    %c0_i32_0 = arith.constant 0 : i32
    return %arg0, %c0_i32 : i32, i32
  }
  func.func @transform_1(%arg0: i32) -> (i32, i32) {
    %c0_i32 = arith.constant 0 : i32
    %c0_i32_0 = arith.constant 0 : i32
    %c0_i32_1 = arith.constant 0 : i32
    return %c0_i32, %c0_i32_0 : i32, i32
  }
  func.func @transform_2(%arg0: i32) -> (i32, i32) {
    %c0_i32 = arith.constant 0 : i32
    %c0_i32_0 = arith.constant 0 : i32
    %c0_i32_1 = arith.constant 0 : i32
    return %c0_i32, %c0_i32_0 : i32, i32
  }
  func.func @transform_3(%arg0: i32) -> (i32, i32) {
    %c0_i32 = arith.constant 0 : i32
    %c0_i32_0 = arith.constant 0 : i32
    return %arg0, %c0_i32 : i32, i32
  }
}

</mosaic_0001>

<bundles_post_ra>
// kernel: basenet_forward.1
= control target key start
LH: loop header
LB: loop body
LE: loop exit
PB: predicated region body
PF: predicated region fallthrough
CT: control target
= control target key end

     0   :  { %v142_v0 = vmov 0.0   ;;  %vm143_vm0 = vmmov 0   ;;  %vm30_vm1 = vcmask 523264   ;;  %vm104_vm2 = vcmask 15360   ;;  %s197_s1 = inlined_call_operand.vmem [shape: f32[64,2], index: 1, kind: input, shape index: {}]   ;;  %s198_s0 = inlined_call_operand.vmem [shape: f32[8,64], index: 0, kind: input, shape index: {}]   ;;  %s199_s2 = inlined_call_operand.vmem [shape: f32[1,2], index: 2, kind: input, shape index: {}]   ;;  %s200_s3 = inlined_call_operand.vmem [shape: f32[8,2], index: 3, kind: output, shape index: {}]  }
   0x1   :  { %121 = vmatprep.subr.mxu0 %v142_v0  ;;  %v22_v1 = vld [vmem:[%s197_s1 + $0x38] sm:$0xff]  ;;  %v21_v2 = vld [vmem:[%s197_s1 + $0x30] sm:$0xff]  ;;  %137 = vmatprep.mubr.msk.f32.mxu0 %vm143_vm0, %v142_v0  ;;  %v20_v3 = vld [vmem:[%s197_s1 + $0x28] sm:$0xff] }
   0x2   :  { %122 = vmatpush3.msra.mxu0 %v22_v1  ;;  %v19_v4 = vld [vmem:[%s197_s1 + $0x20] sm:$0xff]  ;;  %v18_v5 = vld [vmem:[%s197_s1 + $0x18] sm:$0xff]  ;;  %v17_v6 = vld [vmem:[%s197_s1 + $0x10] sm:$0xff] }
   0x3   :  { %123 = vmatprep.subr.mxu0 %v142_v0  ;;  %v16_v7 = vld [vmem:[%s197_s1 + $0x8] sm:$0xff]  ;;  %v15_v8 = vld [vmem:[%s197_s1] sm:$0xff] }
   0x4   :  { %124 = vmatpush3.msra.mxu0 %v21_v2  ;;  %v14_v9 = vld [vmem:[%s198_s0] sm:$0xff] }
   0x5   :  { %125 = vmatprep.subr.mxu0 %v142_v0  ;;  %v110_v10 = vld [vmem:[%s199_s2] ss:$0 sm:$0xff] }
   0x6   :  { %126 = vmatpush3.msra.mxu0 %v20_v3 }
   0x7   :  { %127 = vmatprep.subr.mxu0 %v142_v0 }
   0x8   :  { %128 = vmatpush3.msra.mxu0 %v19_v4 }
   0x9   :  { %129 = vmatprep.subr.mxu0 %v142_v0 }
   0xa   :  { %130 = vmatpush3.msra.mxu0 %v18_v5 }
   0xb   :  { %131 = vmatprep.subr.mxu0 %v142_v0 }
   0xc   :  { %132 = vmatpush3.msra.mxu0 %v17_v6 }
   0xd   :  { %133 = vmatprep.subr.mxu0 %v142_v0 }
   0xe   :  { %134 = vmatpush3.msra.mxu0 %v16_v7 }
   0xf   :  { %135 = vmatprep.subr.mxu0 %v142_v0 }
  0x10   :  { %136 = vmatpush3.msra.mxu0 %v15_v8 }
  0x11   :  { %138 = vmatmul.mubr.msk.f32.vlgmr.msra.gmra.mxu0 %vm30_vm1, %v14_v9 }
  0xd1   :  { %v100_v11 = vpop.f32.mrf.mxu0 }
  0xd2   :  { %v101_v12 = vadd.f32 %v110_v10, %v100_v11 }
  0xd3   :  { %v139_v13 = vpop.f32.mrf.mxu0 }
  0xd4   :  { %105 = vst.msk [vmem:[%s200_s3] sm:$0xff] %vm104_vm2, %v101_v12 }

</bundles_post_ra>
